<compile_context>
chip_gen: v5e
topology: v5e:2x2
jax: 0.10.0
libtpu: 0.0.40
codegen_flags: <defaults>
</compile_context>

<pallas_src>
import functools

import jax
import jax.numpy as jnp
from jax import lax
from jax.experimental import pallas as pl
from jax.experimental.pallas import tpu as pltpu

LANE = 128
SUBLANE = 8
_TARGET_BLOCK_BYTES = 4 * 1024 * 1024   # ~4 MiB streamed input blocks
_MIN_BLOCK_BYTES = 1 * 1024 * 1024      # grouping threshold for tiny per-batch work
_VMEM_LIMIT_BYTES = 32 * 1024 * 1024    # <= physical VMEM on v5e/v6e/v7x


def _reduce_sum_kernel(x_ref, o_ref, acc_ref, *, r_full, r_tile, r_acc, needs_mask):
    # x_ref:   (b_tile, r_tile, LANE)   current input tile (input dtype)
    # o_ref:   (1, 1, b_tile, LANE)     per-(batch-group, range-slice) partial sums (f32)
    # acc_ref: (b_tile, r_acc, LANE)    small f32 accumulator, persists across k
    p = pl.program_id(1)
    k = pl.program_id(2)
    num_k = pl.num_programs(2)

    @pl.when(k == 0)
    def _init():
        acc_ref[...] = jnp.zeros_like(acc_ref)

    def _accumulate(vals):
        # Fold r_tile rows down to r_acc accumulator rows.  The reshape splits
        # the sublane dim at a multiple-of-8 boundary, so it is layout
        # preserving; the sum over the fold axis is pure element-wise VPU adds.
        if r_tile == r_acc:
            acc_ref[...] += vals
        else:
            b_t = vals.shape[0]
            acc_ref[...] += vals.reshape(b_t, r_tile // r_acc, r_acc, LANE).sum(axis=1)

    if not needs_mask:
        # All blocks are fully in-bounds: mask-free hot loop.
        _accumulate(x_ref[...].astype(jnp.float32))
    else:
        # Global row-block index handled by this step.  Rows at or beyond
        # r_full come from the partial edge block (or a fully out-of-range,
        # clamped step) and carry garbage -> zero them before accumulating.
        g = p * num_k + k
        row_limit = r_full - g * r_tile          # valid rows in this block (can be <= 0)

        @pl.when(row_limit >= r_tile)
        def _full():
            _accumulate(x_ref[...].astype(jnp.float32))

        @pl.when(row_limit < r_tile)
        def _partial():
            rows = lax.broadcasted_iota(jnp.int32, x_ref.shape, 1)
            vals = jnp.where(rows < row_limit, x_ref[...].astype(jnp.float32), 0.0)
            _accumulate(vals)

    @pl.when(k == num_k - 1)
    def _finalize():
        acc = acc_ref[...]                                   # (b_tile, r_acc, LANE)
        per_lane = jnp.sum(acc, axis=1)                      # one sublane reduce
        sums = jnp.sum(per_lane, axis=-1, keepdims=True)     # one lane reduce
        # Lane-dense, unmasked store of the per-batch partial sums.
        o_ref[...] = jnp.broadcast_to(
            sums.reshape(1, 1, sums.shape[0], 1), o_ref.shape)


def reduce_mean(x, *, target_block_bytes=_TARGET_BLOCK_BYTES):
    """Pallas equivalent of Reduce.forward: flatten from dim 1, mean over dim 1."""
    B = x.shape[0]
    out_dtype = x.dtype
    if B == 0:
        return jnp.zeros((0,), out_dtype)
    x2d = x.reshape(B, -1)
    N = x2d.shape[1]
    if N == 0:
        return jnp.full((B,), jnp.nan, out_dtype)   # matches torch mean over 0 elements

    itemsize = jnp.dtype(x2d.dtype).itemsize

    # ---- lane packing: view the flattened slab as (B, r_full, 128) -----------
    if N % LANE == 0:
        n_pad = N                                   # free reshape, no copy, no pad
    else:
        # TODO(synk): handle the <128-element lane tail in-kernel (2D layout +
        # lane mask) to avoid this one whole-array copy for lane-misaligned N.
        n_pad = pl.cdiv(N, LANE) * LANE
        x2d = jnp.pad(x2d, ((0, 0), (0, n_pad - N)))   # zeros don't change the sum
    r_full = n_pad // LANE
    x3d = x2d.reshape(B, r_full, LANE)

    # ---- tiling --------------------------------------------------------------
    rows_budget = max(SUBLANE, target_block_bytes // (LANE * itemsize))
    rows_budget = (rows_budget // SUBLANE) * SUBLANE

    if r_full > rows_budget:
        # Streaming case: one batch element per block, many reduction steps.
        b_tile = 1
        r_tile = rows_budget
    else:
        # Whole per-batch row range fits in one block: group batches so each
        # block is >=~1 MiB (amortizes the ~0.35us per-grid-step overhead).
        r_tile = r_full
        per_batch_bytes = max(1, r_full * LANE * itemsize)
        b_cap = max(1, min(B, target_block_bytes // per_batch_bytes, 1024))
        b_tile = 1
        for d in range(b_cap, 0, -1):
            if B % d == 0:
                b_tile = d
                break
        if (b_tile * per_batch_bytes < _MIN_BLOCK_BYTES
                and B <= 1024
                and B * per_batch_bytes <= 2 * target_block_bytes):
            b_tile = B   # e.g. prime B with tiny N: take it all in one block
        # TODO(synk): mask a partial trailing batch group so prime/large B with
        # tiny N never degenerates to b_tile=1.

    num_b = B // b_tile
    total_k = pl.cdiv(r_full, r_tile)

    # v7x has two TensorCores and only a "parallel" grid axis shards across
    # them.  If the batch axis collapsed to a single group, split the row range
    # into two parallel partial sums and combine them in the wrapper.
    num_p = 2 if (num_b == 1 and total_k >= 2) else 1
    num_k = pl.cdiv(total_k, num_p)

    needs_mask = (total_k * r_tile != r_full) or (num_p * num_k != total_k)

    # Small f32 accumulator: a few sublane groups, independent of r_tile.
    if r_tile % SUBLANE != 0:
        r_acc = r_tile                 # tiny full-extent row block
    elif b_tile > 1:
        r_acc = SUBLANE                # grouped path: keep the f32 acc small
    elif r_tile % (4 * SUBLANE) == 0:
        r_acc = 4 * SUBLANE            # 4 independent accumulator groups
    elif r_tile % (2 * SUBLANE) == 0:
        r_acc = 2 * SUBLANE
    else:
        r_acc = SUBLANE

    def x_index_map(b, p, k):
        # Clamp fully-out-of-range steps (possible when total_k % num_p != 0)
        # back onto the last real block; the kernel masks their contribution.
        return (b, jnp.minimum(p * num_k + k, total_k - 1), 0)

    # Optional 3-deep input pipelining to hide DMA jitter on the pure stream.
    x_spec = None
    if (num_b * num_p * num_k) >= 3 and hasattr(pl, "Buffered"):
        try:
            x_spec = pl.BlockSpec((b_tile, r_tile, LANE), x_index_map,
                                  pipeline_mode=pl.Buffered(3))
        except Exception:
            x_spec = None
    if x_spec is None:
        x_spec = pl.BlockSpec((b_tile, r_tile, LANE), x_index_map)

    kernel = functools.partial(_reduce_sum_kernel, r_full=r_full, r_tile=r_tile,
                               r_acc=r_acc, needs_mask=needs_mask)

    partial_sums = pl.pallas_call(
        kernel,
        out_shape=jax.ShapeDtypeStruct((num_b, num_p, b_tile, LANE), jnp.float32),
        grid_spec=pltpu.PrefetchScalarGridSpec(
            num_scalar_prefetch=0,
            grid=(num_b, num_p, num_k),
            in_specs=[x_spec],
            out_specs=pl.BlockSpec((1, 1, b_tile, LANE),
                                   lambda b, p, k: (b, p, 0, 0)),
            scratch_shapes=[pltpu.VMEM((b_tile, r_acc, LANE), jnp.float32)],
        ),
        compiler_params=pltpu.CompilerParams(
            dimension_semantics=("parallel", "parallel", "arbitrary"),
            vmem_limit_bytes=_VMEM_LIMIT_BYTES,
        ),
        cost_estimate=pl.CostEstimate(
            flops=B * n_pad,
            transcendentals=0,
            bytes_accessed=B * n_pad * itemsize + num_b * num_p * b_tile * LANE * 4,
        ),
    )(x3d)

    # Combine the (tiny) per-slice partial sums and divide by the TRUE N.
    sums = partial_sums[:, :, :, 0].sum(axis=1).reshape(num_b * b_tile)
    return (sums[:B] * (1.0 / N)).astype(out_dtype)


if __name__ == "__main__":
    key = jax.random.PRNGKey(0)

    # Primary check: NCHW input consistent with the module's flatten-from-dim-1.
    x = jax.random.normal(key, (2, 4, 16, 16), dtype=jnp.float32)
    y = reduce_mean(x)
    jax.block_until_ready(y)
    y_ref = jnp.mean(x.reshape(x.shape[0], -1), axis=1)
    assert y.shape == (2,)
    assert jnp.allclose(y, y_ref, atol=1e-5, rtol=1e-5)

    # Extra small checks exercising the other code paths:
    #  - lane-misaligned N (pad-to-128 fallback),
    #  - multi-step reduction with masked ragged tail + accumulator fold,
    #  - two-way parallel reduction split (single batch group) with clamped step.
    for shape, tb in (((3, 5, 7, 11), _TARGET_BLOCK_BYTES),
                      ((2, 80, 128), 64 * LANE * 4),
                      ((1, 40, 64), 8 * LANE * 4)):
        key, sub = jax.random.split(key)
        xs = jax.random.normal(sub, shape, dtype=jnp.float32)
        ys = reduce_mean(xs, target_block_bytes=tb)
        jax.block_until_ready(ys)
        ys_ref = jnp.mean(xs.reshape(shape[0], -1), axis=1)
        assert jnp.allclose(ys, ys_ref, atol=1e-5, rtol=1e-5), shape

    print("KERNEL_OK")
</pallas_src>

<mosaic_0001>
module attributes {stable_mosaic.version = 11 : i64} {
  func.func @_reduce_sum_kernel(%arg0: i32, %arg1: i32, %arg2: i32, %arg3: memref<2x8x128xf32, #tpu.memory_space<vmem>>, %arg4: memref<1x1x2x128xf32, #tpu.memory_space<vmem>>, %arg5: memref<2x8x128xf32, #tpu.memory_space<vmem>>) attributes {dimension_semantics = [#tpu.dimension_semantics<parallel>, #tpu.dimension_semantics<parallel>, #tpu.dimension_semantics<arbitrary>], iteration_bounds = array<i64: 1, 1, 1>, scalar_prefetch = 0 : i64, scratch_operands = 1 : i64, tpu.core_type = #tpu.core_type<tc>, window_params = [{transform_indices = @transform_0, window_bounds = array<i64: 2, 8, 128>}, {transform_indices = @transform_1, window_bounds = array<i64: 1, 1, 2, 128>}]} {
    %c0_i32 = arith.constant 0 : i32
    %0 = arith.cmpi eq, %arg2, %c0_i32 : i32
    %1 = arith.extui %0 : i1 to i32
    %c0_i32_0 = arith.constant 0 : i32
    %2 = arith.cmpi ne, %1, %c0_i32_0 : i32
    scf.if %2 {
      %cst = arith.constant 0.000000e+00 : f32
      %10 = vector.broadcast %cst : f32 to vector<2x8x128xf32>
      %c0_11 = arith.constant 0 : index
      %c0_12 = arith.constant 0 : index
      %c0_13 = arith.constant 0 : index
      %11 = vector.load %arg5[%c0_11, %c0_12, %c0_13] : memref<2x8x128xf32, #tpu.memory_space<vmem>>, vector<2x8x128xf32>
      tpu.vector_store %arg5[%c0_11, %c0_12, %c0_13], %10 {strides = array<i32>} : memref<2x8x128xf32, #tpu.memory_space<vmem>>, vector<2x8x128xf32>,
    } else {
    }
    %c0 = arith.constant 0 : index
    %c0_1 = arith.constant 0 : index
    %c0_2 = arith.constant 0 : index
    %3 = vector.load %arg3[%c0, %c0_1, %c0_2] : memref<2x8x128xf32, #tpu.memory_space<vmem>>, vector<2x8x128xf32>
    %c0_3 = arith.constant 0 : index
    %c0_4 = arith.constant 0 : index
    %c0_5 = arith.constant 0 : index
    %4 = vector.load %arg5[%c0_3, %c0_4, %c0_5] : memref<2x8x128xf32, #tpu.memory_space<vmem>>, vector<2x8x128xf32>
    %5 = arith.addf %4, %3 : vector<2x8x128xf32>
    %c0_6 = arith.constant 0 : index
    %c0_7 = arith.constant 0 : index
    %c0_8 = arith.constant 0 : index
    %6 = vector.load %arg5[%c0_6, %c0_7, %c0_8] : memref<2x8x128xf32, #tpu.memory_space<vmem>>, vector<2x8x128xf32>
    tpu.vector_store %arg5[%c0_6, %c0_7, %c0_8], %5 {strides = array<i32>} : memref<2x8x128xf32, #tpu.memory_space<vmem>>, vector<2x8x128xf32>,
    %c0_i32_9 = arith.constant 0 : i32
    %7 = arith.cmpi eq, %arg2, %c0_i32_9 : i32
    %8 = arith.extui %7 : i1 to i32
    %c0_i32_10 = arith.constant 0 : i32
    %9 = arith.cmpi ne, %8, %c0_i32_10 : i32
    scf.if %9 {
      %c0_11 = arith.constant 0 : index
      %c0_12 = arith.constant 0 : index
      %c0_13 = arith.constant 0 : index
      %10 = vector.load %arg5[%c0_11, %c0_12, %c0_13] : memref<2x8x128xf32, #tpu.memory_space<vmem>>, vector<2x8x128xf32>
      %cst = arith.constant dense<0.000000e+00> : vector<2x128xf32>
      %11 = vector.multi_reduction <add>, %10, %cst [1] : vector<2x8x128xf32> to vector<2x128xf32>
      %cst_14 = arith.constant dense<0.000000e+00> : vector<2xf32>
      %12 = vector.multi_reduction <add>, %11, %cst_14 [1] : vector<2x128xf32> to vector<2xf32>
      %13 = vector.shape_cast %12 : vector<2xf32> to vector<2x1xf32>
      %14 = vector.shape_cast %13 : vector<2x1xf32> to vector<1x1x2x1xf32>
      %15 = vector.shape_cast %14 : vector<1x1x2x1xf32> to vector<1x1x2x1xf32>
      %16 = vector.broadcast %15 : vector<1x1x2x1xf32> to vector<1x1x2x128xf32>
      %c0_15 = arith.constant 0 : index
      %c0_16 = arith.constant 0 : index
      %c0_17 = arith.constant 0 : index
      %c0_18 = arith.constant 0 : index
      %17 = vector.load %arg4[%c0_15, %c0_16, %c0_17, %c0_18] : memref<1x1x2x128xf32, #tpu.memory_space<vmem>>, vector<1x1x2x128xf32>
      tpu.vector_store %arg4[%c0_15, %c0_16, %c0_17, %c0_18], %16 {strides = array<i32>} : memref<1x1x2x128xf32, #tpu.memory_space<vmem>>, vector<1x1x2x128xf32>,
    } else {
    }
    return
  }
  func.func @transform_0(%arg0: i32, %arg1: i32, %arg2: i32) -> (i32, i32, i32) {
    %c1_i32 = arith.constant 1 : i32
    %0 = arith.muli %arg1, %c1_i32 : i32
    %1 = arith.addi %0, %arg2 : i32
    %c0_i32 = arith.constant 0 : i32
    %2 = arith.minsi %1, %c0_i32 : i32
    %c0_i32_0 = arith.constant 0 : i32
    %c0_i32_1 = arith.constant 0 : i32
    return %arg0, %2, %c0_i32_0 : i32, i32, i32
  }
  func.func @transform_1(%arg0: i32, %arg1: i32, %arg2: i32) -> (i32, i32, i32, i32) {
    %c0_i32 = arith.constant 0 : i32
    %c0_i32_0 = arith.constant 0 : i32
    %c0_i32_1 = arith.constant 0 : i32
    return %arg0, %arg1, %c0_i32, %c0_i32_0 : i32, i32, i32, i32
  }
}

</mosaic_0001>

<bundles_post_ra>
// kernel: tpu_custom_call.1
= control target key start
LH: loop header
LB: loop body
LE: loop exit
PB: predicated region body
PF: predicated region fallthrough
CT: control target
= control target key end

     0   :  { %6 = vsyncpa [#allocation4], 0  ;;  %s169_s0 = inlined_call_operand.hbm [shape: f32[2,8,128], index: 0, kind: input, shape index: {}]   ;;  %s170_s1 = inlined_call_operand.hbm [shape: f32[1,1,2,128], index: 1, kind: output, shape index: {}]  }
   0x1   :  { %7 = vsyncpa [#allocation5], 0  ;;  %s17_s8 = sshll.u32 %s169_s0, 4  ;;  %s149_s9 = smov [#allocation3]   ;;  %s18_s8 = int_to_ptr.hbm [resolvable:$true] %s17_s8 }
   0x2   :  { %s19_s10 = sshll.u32 %s149_s9, 4  ;;  %s150_s11 = smov 128   ;;  %s20_s10 = int_to_ptr.vmem [resolvable:$true] %s19_s10 }
   0x3   :  { %s151_s12 = smov 8  }
   0x4   :  { %25 = dma.hbm_to_vmem [thread:$0]  %s18_s8, 256, %s20_s10, [#allocation4], %s150_s11, %s150_s11, %s151_s12  }
   0x5   :  { %145 = dma.done.wait [#allocation4], 256  }
   0x6   :  { %146 = vsyncadd [#allocation4], 4294967040  ;;  %v39_v0 = vld [vmem:[#allocation3] sm:$0xff]  ;;  %v40_v1 = vld [vmem:[#allocation3 + $0x8] sm:$0xff]  ;;  %vm66_vm0 = vcmask 1041409   ;;  %vm69_vm1 = vcmask 1041408  }
   0x7   :  { %v52_v2 = vrot.slane %v39_v0, 4  ;;  %v58_v3 = vrot.slane %v40_v1, 4  ;;  %s152_s0 = smov [#allocation6]   ;;  %s81_s16 = sshll.u32 %s170_s1, 4  ;;  %s82_s16 = int_to_ptr.hbm [resolvable:$true] %s81_s16 }
   0x8   :  { %s79_s13 = sshll.u32 %s152_s0, 4  ;;  %s80_s13 = int_to_ptr.vmem [resolvable:$true] %s79_s13 }
   0x9   :  { %v53_v4 = vadd.f32 %v52_v2, %v39_v0  ;;  %v59_v5 = vadd.f32 %v58_v3, %v40_v1 }
   0xb   :  { %v54_v6 = vrot.slane %v53_v4, 2  ;;  %v60_v7 = vrot.slane %v59_v5, 2 }
   0xd   :  { %v55_v8 = vadd.f32 %v54_v6, %v53_v4  ;;  %v61_v9 = vadd.f32 %v60_v7, %v59_v5 }
   0xf   :  { %v56_v10 = vrot.slane %v55_v8, 1  ;;  %v62_v11 = vrot.slane %v61_v9, 1 }
  0x11   :  { %v57_v12 = vadd.f32 %v56_v10, %v55_v8  ;;  %v63_v13 = vadd.f32 %v62_v11, %v61_v9 }
  0x13   :  { %v67_v14 = vsel %vm66_vm0, %v63_v13, %v57_v12 }
  0x14   :  { %v70_v15 = vsel %vm69_vm1, %v67_v14, 0.0 }
  0x15   :  { %71 = vadd.xlane.f32.xlu0 %v70_v15 }
  0x88   :  { %v72_v16 = vpop.xlane.xlu0 %71 }
  0x89   :  { %73 = vst [vmem:[#allocation6] sm:$0x3] %v72_v16 }
  0x8a   :  { %84 = dma.vmem_to_hbm [thread:$0]  %s80_s13, 32, %s82_s16, [#allocation5]  }
  0x8b   :  { %147 = dma.done.wait [#allocation5], 32  }
  0x8c   :  { %148 = vsyncadd [#allocation5], 4294967264 }
  0x8d   :  { %89 = vsyncpa [#allocation4], 1 }
  0x8e   :  { %90 = vsyncpa [#allocation5], 1 }

</bundles_post_ra>
